<compile_context>
chip_gen: v7x
topology: tpu7x:2x2x1
jax: 0.10.0
libtpu: 0.0.40
codegen_flags: <defaults>
</compile_context>

<pallas_src>
import functools

import jax
import jax.numpy as jnp
from jax.experimental import pallas as pl
from jax.experimental.pallas import tpu as pltpu

_LANES = 128
_SUBLANES = 8
_VMEM_LIMIT = 32 * 1024 * 1024


def _round_down(x, m):
    return (x // m) * m


# --------------------------------------------------------------------------- #
# Packed path: k = 128 // D original rows per 128-lane vreg row.               #
# --------------------------------------------------------------------------- #
def _packed_kernel(x_ref, y_ref, o_ref, *, seg, n_rows, tm):
    """x_ref / y_ref: (tm, 128) tiles of the packed (n_rows, 128) arrays.

    Each 128-lane row holds 128 // seg original rows of width `seg`; softmax
    reductions are segmented all-reduces over aligned seg-lane groups.
    """
    i = pl.program_id(0)

    x = x_ref[...].astype(jnp.float32)
    y = y_ref[...].astype(jnp.float32)

    # Mask packed rows past the end of the array (ragged last tile). Zeroed
    # rows give identical uniform softmaxes -> exactly 0 KL contribution.
    row = jax.lax.broadcasted_iota(jnp.int32, (tm, _LANES), 0) + i * tm
    valid = row < n_rows
    x = jnp.where(valid, x, 0.0)
    y = jnp.where(valid, y, 0.0)

    lane = jax.lax.broadcasted_iota(jnp.int32, (tm, _LANES), 1)

    # Precompute (once per tile) the masks that pick the XOR-partner lane out
    # of the two rolled candidates. Rolling the lane iota alongside the data
    # makes this independent of the hardware roll direction convention.
    steps = []
    s = 1
    while s < seg:
        lane_a = pltpu.roll(lane, shift=s, axis=1)
        pick_a = lane_a == (lane ^ s)
        steps.append((s, pick_a))
        s *= 2

    def seg_allreduce(v, op):
        # Hypercube butterfly within each aligned seg-lane group: after
        # log2(seg) steps every lane holds the reduction over its group.
        for shift, pick_a in steps:
            a = pltpu.roll(v, shift=shift, axis=1)
            b = pltpu.roll(v, shift=_LANES - shift, axis=1)
            v = op(v, jnp.where(pick_a, a, b))
        return v

    # log-softmax of logits1 (per original row == per seg-lane group)
    xm = seg_allreduce(x, jnp.maximum)
    xs = x - xm
    sx = seg_allreduce(jnp.exp(xs), jnp.add)
    log_p1 = xs - jnp.log(sx)

    # softmax / log-softmax of logits2 (reciprocal goes to the EUP slot)
    ym = seg_allreduce(y, jnp.maximum)
    ys = y - ym
    ey = jnp.exp(ys)
    sy = seg_allreduce(ey, jnp.add)
    log_p2 = ys - jnp.log(sy)

    kl = (ey * pl.reciprocal(sy)) * (log_p2 - log_p1)
    kl = jnp.where(valid, kl, 0.0)

    # Per-tile partial: fold vreg-row groups with pure VPU adds into a
    # lane-dense (8,128) slab; the tiny final reduction is done in the wrapper.
    partial = jnp.sum(kl.reshape(tm // _SUBLANES, _SUBLANES, _LANES), axis=0)
    o_ref[...] = partial.reshape(1, _SUBLANES, _LANES)


def _packed_call(x2d, y2d, *, tm_max=1024):
    m, d = x2d.shape
    k = _LANES // d
    n_rows = m // k
    # Free views (row-major collapse): no HBM data movement.
    xp = x2d.reshape(n_rows, _LANES)
    yp = y2d.reshape(n_rows, _LANES)

    tm = max(_SUBLANES, min(_round_down(tm_max, _SUBLANES),
                            _round_down(n_rows, _SUBLANES)))
    grid = pl.cdiv(n_rows, tm)

    kernel = functools.partial(_packed_kernel, seg=d, n_rows=n_rows, tm=tm)
    partials = pl.pallas_call(
        kernel,
        out_shape=jax.ShapeDtypeStruct((grid, _SUBLANES, _LANES), jnp.float32),
        grid=(grid,),
        in_specs=[
            pl.BlockSpec((tm, _LANES), lambda i: (i, 0)),
            pl.BlockSpec((tm, _LANES), lambda i: (i, 0)),
        ],
        out_specs=pl.BlockSpec((1, _SUBLANES, _LANES), lambda i: (i, 0, 0)),
        compiler_params=pltpu.CompilerParams(
            dimension_semantics=("parallel",),   # per-tile outputs -> both v7x TCs
            vmem_limit_bytes=_VMEM_LIMIT,
        ),
    )(xp, yp)
    return jnp.sum(partials)  # tiny tree-sum in the wrapper


# --------------------------------------------------------------------------- #
# Generic path (any D): plain (tm, D) tiles, resident scalar accumulator.      #
# --------------------------------------------------------------------------- #
def _generic_kernel(x_ref, y_ref, o_ref, *, n_rows, tm):
    i = pl.program_id(0)

    @pl.when(i == 0)
    def _():
        o_ref[...] = jnp.zeros_like(o_ref)

    x = x_ref[...].astype(jnp.float32)
    y = y_ref[...].astype(jnp.float32)

    row = jax.lax.broadcasted_iota(jnp.int32, x.shape, 0) + i * tm
    valid = row < n_rows
    x = jnp.where(valid, x, 0.0)
    y = jnp.where(valid, y, 0.0)

    xm = jnp.max(x, axis=-1, keepdims=True)
    xs = x - xm
    sx = jnp.sum(jnp.exp(xs), axis=-1, keepdims=True)
    log_p1 = xs - jnp.log(sx)

    ym = jnp.max(y, axis=-1, keepdims=True)
    ys = y - ym
    ey = jnp.exp(ys)
    sy = jnp.sum(ey, axis=-1, keepdims=True)
    log_p2 = ys - jnp.log(sy)

    kl = (ey * pl.reciprocal(sy)) * (log_p2 - log_p1)
    kl = jnp.where(valid, kl, 0.0)
    o_ref[0, 0] += jnp.sum(kl)


def _generic_call(x2d, y2d, *, tm_max=4096):
    m, d = x2d.shape
    # ~2 MiB per input per pipeline buffer.
    tm_budget = max(_SUBLANES, (2 * 1024 * 1024) // max(d * 4, 1))
    if m >= _SUBLANES:
        tm = min(_round_down(min(tm_budget, tm_max), _SUBLANES),
                 _round_down(m, _SUBLANES))
        tm = max(tm, _SUBLANES)
    else:
        tm = m
    grid = pl.cdiv(m, tm)

    kernel = functools.partial(_generic_kernel, n_rows=m, tm=tm)
    out = pl.pallas_call(
        kernel,
        out_shape=jax.ShapeDtypeStruct((1, 1), jnp.float32),
        grid=(grid,),
        in_specs=[
            pl.BlockSpec((tm, d), lambda i: (i, 0)),
            pl.BlockSpec((tm, d), lambda i: (i, 0)),
        ],
        out_specs=pl.BlockSpec((1, 1), lambda i: (0, 0)),
        compiler_params=pltpu.CompilerParams(
            dimension_semantics=("arbitrary",),  # resident accumulator
            vmem_limit_bytes=_VMEM_LIMIT,
        ),
    )(x2d, y2d)
    return out[0, 0]


# --------------------------------------------------------------------------- #
# Public entry point (matches ProbabilityLoss.forward).                        #
# --------------------------------------------------------------------------- #
def probability_loss(logits1, logits2, *, block_rows=1024):
    assert logits1.shape == logits2.shape
    d = logits1.shape[-1]
    x = logits1.reshape(-1, d)
    y = logits2.reshape(-1, d)
    m = x.shape[0]
    if m == 0 or d == 0:
        return jnp.float32(0.0)

    if d < _LANES and _LANES % d == 0:
        k = _LANES // d
        if m % k == 0 and (m // k) >= _SUBLANES:
            return _packed_call(x, y, tm_max=block_rows)
    return _generic_call(x, y)


if __name__ == "__main__":
    key = jax.random.PRNGKey(0)
    k1, k2 = jax.random.split(key)

    # NCHW logits; softmax/KL over the last axis (W = 16), as in the PyTorch module.
    logits1 = jax.random.normal(k1, (2, 4, 16, 16), dtype=jnp.float32)
    logits2 = jax.random.normal(k2, (2, 4, 16, 16), dtype=jnp.float32)

    loss = probability_loss(logits1, logits2)
    loss = jax.block_until_ready(loss)

    p1 = jax.nn.softmax(logits1, axis=-1)
    p2 = jax.nn.softmax(logits2, axis=-1)
    ref = jnp.sum(p2 * (jnp.log(p2) - jnp.log(p1)))
    assert jnp.allclose(loss, ref, rtol=1e-4, atol=1e-4), (loss, ref)

    # Also exercise the generic (non-packed, ragged-tile) path on an odd shape.
    a = jax.random.normal(k1, (3, 5, 37), dtype=jnp.float32)
    b = jax.random.normal(k2, (3, 5, 37), dtype=jnp.float32)
    loss2 = jax.block_until_ready(probability_loss(a, b))
    pa = jax.nn.softmax(a, axis=-1)
    pb = jax.nn.softmax(b, axis=-1)
    ref2 = jnp.sum(pb * (jnp.log(pb) - jnp.log(pa)))
    assert jnp.allclose(loss2, ref2, rtol=1e-4, atol=1e-4), (loss2, ref2)

    print("KERNEL_OK")
</pallas_src>

<mosaic_0001>
module attributes {stable_mosaic.version = 11 : i64} {
  func.func @_packed_kernel(%arg0: i32, %arg1: memref<16x128xf32, #tpu.memory_space<vmem>>, %arg2: memref<16x128xf32, #tpu.memory_space<vmem>>, %arg3: memref<1x8x128xf32, #tpu.memory_space<vmem>>) attributes {dimension_semantics = [#tpu.dimension_semantics<parallel>], iteration_bounds = array<i64: 1>, scalar_prefetch = 0 : i64, scratch_operands = 0 : i64, tpu.core_type = #tpu.core_type<tc>, window_params = [{transform_indices = @transform_0, window_bounds = array<i64: 16, 128>}, {transform_indices = @transform_1, window_bounds = array<i64: 16, 128>}, {transform_indices = @transform_2, window_bounds = array<i64: 1, 8, 128>}]} {
    %c0 = arith.constant 0 : index
    %c0_0 = arith.constant 0 : index
    %0 = vector.load %arg1[%c0, %c0_0] : memref<16x128xf32, #tpu.memory_space<vmem>>, vector<16x128xf32>
    %c0_1 = arith.constant 0 : index
    %c0_2 = arith.constant 0 : index
    %1 = vector.load %arg2[%c0_1, %c0_2] : memref<16x128xf32, #tpu.memory_space<vmem>>, vector<16x128xf32>
    %2 = tpu.iota {dimensions = array<i32: 0>} : vector<16x128xi32>
    %c16_i32 = arith.constant 16 : i32
    %3 = arith.muli %arg0, %c16_i32 : i32
    %4 = vector.broadcast %3 : i32 to vector<16x128xi32>
    %5 = arith.addi %2, %4 : vector<16x128xi32>
    %c16_i32_3 = arith.constant 16 : i32
    %6 = vector.broadcast %c16_i32_3 : i32 to vector<16x128xi32>
    %7 = arith.cmpi slt, %5, %6 : vector<16x128xi32>
    %cst = arith.constant 0.000000e+00 : f32
    %8 = vector.broadcast %cst : f32 to vector<16x128xf32>
    %9 = arith.select %7, %0, %8 : vector<16x128xi1>, vector<16x128xf32>
    %cst_4 = arith.constant 0.000000e+00 : f32
    %10 = vector.broadcast %cst_4 : f32 to vector<16x128xf32>
    %11 = arith.select %7, %1, %10 : vector<16x128xi1>, vector<16x128xf32>
    %12 = tpu.iota {dimensions = array<i32: 1>} : vector<16x128xi32>
    %c1_i32 = arith.constant 1 : i32
    %13 = tpu.dynamic_rotate %12 by %c1_i32 dim 1 : vector<16x128xi32>, i32 -> vector<16x128xi32>
    %c1_i32_5 = arith.constant 1 : i32
    %14 = vector.broadcast %c1_i32_5 : i32 to vector<16x128xi32>
    %15 = arith.xori %12, %14 : vector<16x128xi32>
    %16 = arith.cmpi eq, %13, %15 : vector<16x128xi32>
    %c2_i32 = arith.constant 2 : i32
    %17 = tpu.dynamic_rotate %12 by %c2_i32 dim 1 : vector<16x128xi32>, i32 -> vector<16x128xi32>
    %c2_i32_6 = arith.constant 2 : i32
    %18 = vector.broadcast %c2_i32_6 : i32 to vector<16x128xi32>
    %19 = arith.xori %12, %18 : vector<16x128xi32>
    %20 = arith.cmpi eq, %17, %19 : vector<16x128xi32>
    %c4_i32 = arith.constant 4 : i32
    %21 = tpu.dynamic_rotate %12 by %c4_i32 dim 1 : vector<16x128xi32>, i32 -> vector<16x128xi32>
    %c4_i32_7 = arith.constant 4 : i32
    %22 = vector.broadcast %c4_i32_7 : i32 to vector<16x128xi32>
    %23 = arith.xori %12, %22 : vector<16x128xi32>
    %24 = arith.cmpi eq, %21, %23 : vector<16x128xi32>
    %c8_i32 = arith.constant 8 : i32
    %25 = tpu.dynamic_rotate %12 by %c8_i32 dim 1 : vector<16x128xi32>, i32 -> vector<16x128xi32>
    %c8_i32_8 = arith.constant 8 : i32
    %26 = vector.broadcast %c8_i32_8 : i32 to vector<16x128xi32>
    %27 = arith.xori %12, %26 : vector<16x128xi32>
    %28 = arith.cmpi eq, %25, %27 : vector<16x128xi32>
    %c1_i32_9 = arith.constant 1 : i32
    %29 = tpu.dynamic_rotate %9 by %c1_i32_9 dim 1 : vector<16x128xf32>, i32 -> vector<16x128xf32>
    %c127_i32 = arith.constant 127 : i32
    %30 = tpu.dynamic_rotate %9 by %c127_i32 dim 1 : vector<16x128xf32>, i32 -> vector<16x128xf32>
    %31 = arith.select %16, %29, %30 : vector<16x128xi1>, vector<16x128xf32>
    %32 = arith.maximumf %9, %31 : vector<16x128xf32>
    %c2_i32_10 = arith.constant 2 : i32
    %33 = tpu.dynamic_rotate %32 by %c2_i32_10 dim 1 : vector<16x128xf32>, i32 -> vector<16x128xf32>
    %c126_i32 = arith.constant 126 : i32
    %34 = tpu.dynamic_rotate %32 by %c126_i32 dim 1 : vector<16x128xf32>, i32 -> vector<16x128xf32>
    %35 = arith.select %20, %33, %34 : vector<16x128xi1>, vector<16x128xf32>
    %36 = arith.maximumf %32, %35 : vector<16x128xf32>
    %c4_i32_11 = arith.constant 4 : i32
    %37 = tpu.dynamic_rotate %36 by %c4_i32_11 dim 1 : vector<16x128xf32>, i32 -> vector<16x128xf32>
    %c124_i32 = arith.constant 124 : i32
    %38 = tpu.dynamic_rotate %36 by %c124_i32 dim 1 : vector<16x128xf32>, i32 -> vector<16x128xf32>
    %39 = arith.select %24, %37, %38 : vector<16x128xi1>, vector<16x128xf32>
    %40 = arith.maximumf %36, %39 : vector<16x128xf32>
    %c8_i32_12 = arith.constant 8 : i32
    %41 = tpu.dynamic_rotate %40 by %c8_i32_12 dim 1 : vector<16x128xf32>, i32 -> vector<16x128xf32>
    %c120_i32 = arith.constant 120 : i32
    %42 = tpu.dynamic_rotate %40 by %c120_i32 dim 1 : vector<16x128xf32>, i32 -> vector<16x128xf32>
    %43 = arith.select %28, %41, %42 : vector<16x128xi1>, vector<16x128xf32>
    %44 = arith.maximumf %40, %43 : vector<16x128xf32>
    %45 = arith.subf %9, %44 : vector<16x128xf32>
    %46 = math.exp %45 : vector<16x128xf32>
    %c1_i32_13 = arith.constant 1 : i32
    %47 = tpu.dynamic_rotate %46 by %c1_i32_13 dim 1 : vector<16x128xf32>, i32 -> vector<16x128xf32>
    %c127_i32_14 = arith.constant 127 : i32
    %48 = tpu.dynamic_rotate %46 by %c127_i32_14 dim 1 : vector<16x128xf32>, i32 -> vector<16x128xf32>
    %49 = arith.select %16, %47, %48 : vector<16x128xi1>, vector<16x128xf32>
    %50 = arith.addf %46, %49 : vector<16x128xf32>
    %c2_i32_15 = arith.constant 2 : i32
    %51 = tpu.dynamic_rotate %50 by %c2_i32_15 dim 1 : vector<16x128xf32>, i32 -> vector<16x128xf32>
    %c126_i32_16 = arith.constant 126 : i32
    %52 = tpu.dynamic_rotate %50 by %c126_i32_16 dim 1 : vector<16x128xf32>, i32 -> vector<16x128xf32>
    %53 = arith.select %20, %51, %52 : vector<16x128xi1>, vector<16x128xf32>
    %54 = arith.addf %50, %53 : vector<16x128xf32>
    %c4_i32_17 = arith.constant 4 : i32
    %55 = tpu.dynamic_rotate %54 by %c4_i32_17 dim 1 : vector<16x128xf32>, i32 -> vector<16x128xf32>
    %c124_i32_18 = arith.constant 124 : i32
    %56 = tpu.dynamic_rotate %54 by %c124_i32_18 dim 1 : vector<16x128xf32>, i32 -> vector<16x128xf32>
    %57 = arith.select %24, %55, %56 : vector<16x128xi1>, vector<16x128xf32>
    %58 = arith.addf %54, %57 : vector<16x128xf32>
    %c8_i32_19 = arith.constant 8 : i32
    %59 = tpu.dynamic_rotate %58 by %c8_i32_19 dim 1 : vector<16x128xf32>, i32 -> vector<16x128xf32>
    %c120_i32_20 = arith.constant 120 : i32
    %60 = tpu.dynamic_rotate %58 by %c120_i32_20 dim 1 : vector<16x128xf32>, i32 -> vector<16x128xf32>
    %61 = arith.select %28, %59, %60 : vector<16x128xi1>, vector<16x128xf32>
    %62 = arith.addf %58, %61 : vector<16x128xf32>
    %63 = math.log %62 : vector<16x128xf32>
    %64 = arith.subf %45, %63 : vector<16x128xf32>
    %c1_i32_21 = arith.constant 1 : i32
    %65 = tpu.dynamic_rotate %11 by %c1_i32_21 dim 1 : vector<16x128xf32>, i32 -> vector<16x128xf32>
    %c127_i32_22 = arith.constant 127 : i32
    %66 = tpu.dynamic_rotate %11 by %c127_i32_22 dim 1 : vector<16x128xf32>, i32 -> vector<16x128xf32>
    %67 = arith.select %16, %65, %66 : vector<16x128xi1>, vector<16x128xf32>
    %68 = arith.maximumf %11, %67 : vector<16x128xf32>
    %c2_i32_23 = arith.constant 2 : i32
    %69 = tpu.dynamic_rotate %68 by %c2_i32_23 dim 1 : vector<16x128xf32>, i32 -> vector<16x128xf32>
    %c126_i32_24 = arith.constant 126 : i32
    %70 = tpu.dynamic_rotate %68 by %c126_i32_24 dim 1 : vector<16x128xf32>, i32 -> vector<16x128xf32>
    %71 = arith.select %20, %69, %70 : vector<16x128xi1>, vector<16x128xf32>
    %72 = arith.maximumf %68, %71 : vector<16x128xf32>
    %c4_i32_25 = arith.constant 4 : i32
    %73 = tpu.dynamic_rotate %72 by %c4_i32_25 dim 1 : vector<16x128xf32>, i32 -> vector<16x128xf32>
    %c124_i32_26 = arith.constant 124 : i32
    %74 = tpu.dynamic_rotate %72 by %c124_i32_26 dim 1 : vector<16x128xf32>, i32 -> vector<16x128xf32>
    %75 = arith.select %24, %73, %74 : vector<16x128xi1>, vector<16x128xf32>
    %76 = arith.maximumf %72, %75 : vector<16x128xf32>
    %c8_i32_27 = arith.constant 8 : i32
    %77 = tpu.dynamic_rotate %76 by %c8_i32_27 dim 1 : vector<16x128xf32>, i32 -> vector<16x128xf32>
    %c120_i32_28 = arith.constant 120 : i32
    %78 = tpu.dynamic_rotate %76 by %c120_i32_28 dim 1 : vector<16x128xf32>, i32 -> vector<16x128xf32>
    %79 = arith.select %28, %77, %78 : vector<16x128xi1>, vector<16x128xf32>
    %80 = arith.maximumf %76, %79 : vector<16x128xf32>
    %81 = arith.subf %11, %80 : vector<16x128xf32>
    %82 = math.exp %81 : vector<16x128xf32>
    %c1_i32_29 = arith.constant 1 : i32
    %83 = tpu.dynamic_rotate %82 by %c1_i32_29 dim 1 : vector<16x128xf32>, i32 -> vector<16x128xf32>
    %c127_i32_30 = arith.constant 127 : i32
    %84 = tpu.dynamic_rotate %82 by %c127_i32_30 dim 1 : vector<16x128xf32>, i32 -> vector<16x128xf32>
    %85 = arith.select %16, %83, %84 : vector<16x128xi1>, vector<16x128xf32>
    %86 = arith.addf %82, %85 : vector<16x128xf32>
    %c2_i32_31 = arith.constant 2 : i32
    %87 = tpu.dynamic_rotate %86 by %c2_i32_31 dim 1 : vector<16x128xf32>, i32 -> vector<16x128xf32>
    %c126_i32_32 = arith.constant 126 : i32
    %88 = tpu.dynamic_rotate %86 by %c126_i32_32 dim 1 : vector<16x128xf32>, i32 -> vector<16x128xf32>
    %89 = arith.select %20, %87, %88 : vector<16x128xi1>, vector<16x128xf32>
    %90 = arith.addf %86, %89 : vector<16x128xf32>
    %c4_i32_33 = arith.constant 4 : i32
    %91 = tpu.dynamic_rotate %90 by %c4_i32_33 dim 1 : vector<16x128xf32>, i32 -> vector<16x128xf32>
    %c124_i32_34 = arith.constant 124 : i32
    %92 = tpu.dynamic_rotate %90 by %c124_i32_34 dim 1 : vector<16x128xf32>, i32 -> vector<16x128xf32>
    %93 = arith.select %24, %91, %92 : vector<16x128xi1>, vector<16x128xf32>
    %94 = arith.addf %90, %93 : vector<16x128xf32>
    %c8_i32_35 = arith.constant 8 : i32
    %95 = tpu.dynamic_rotate %94 by %c8_i32_35 dim 1 : vector<16x128xf32>, i32 -> vector<16x128xf32>
    %c120_i32_36 = arith.constant 120 : i32
    %96 = tpu.dynamic_rotate %94 by %c120_i32_36 dim 1 : vector<16x128xf32>, i32 -> vector<16x128xf32>
    %97 = arith.select %28, %95, %96 : vector<16x128xi1>, vector<16x128xf32>
    %98 = arith.addf %94, %97 : vector<16x128xf32>
    %99 = math.log %98 : vector<16x128xf32>
    %100 = arith.subf %81, %99 : vector<16x128xf32>
    %101 = tpu.reciprocal %98 : vector<16x128xf32> -> vector<16x128xf32>
    %102 = arith.mulf %82, %101 : vector<16x128xf32>
    %103 = arith.subf %100, %64 : vector<16x128xf32>
    %104 = arith.mulf %102, %103 : vector<16x128xf32>
    %cst_37 = arith.constant 0.000000e+00 : f32
    %105 = vector.broadcast %cst_37 : f32 to vector<16x128xf32>
    %106 = arith.select %7, %104, %105 : vector<16x128xi1>, vector<16x128xf32>
    %107 = vector.shape_cast %106 : vector<16x128xf32> to vector<2x8x128xf32>
    %cst_38 = arith.constant dense<0.000000e+00> : vector<8x128xf32>
    %108 = vector.multi_reduction <add>, %107, %cst_38 [0] : vector<2x8x128xf32> to vector<8x128xf32>
    %109 = vector.shape_cast %108 : vector<8x128xf32> to vector<1x8x128xf32>
    %c0_39 = arith.constant 0 : index
    %c0_40 = arith.constant 0 : index
    %c0_41 = arith.constant 0 : index
    %110 = vector.load %arg3[%c0_39, %c0_40, %c0_41] : memref<1x8x128xf32, #tpu.memory_space<vmem>>, vector<1x8x128xf32>
    tpu.vector_store %arg3[%c0_39, %c0_40, %c0_41], %109 {strides = array<i32>} : memref<1x8x128xf32, #tpu.memory_space<vmem>>, vector<1x8x128xf32>,
    return
  }
  func.func @transform_0(%arg0: i32) -> (i32, i32) {
    %c0_i32 = arith.constant 0 : i32
    %c0_i32_0 = arith.constant 0 : i32
    return %arg0, %c0_i32 : i32, i32
  }
  func.func @transform_1(%arg0: i32) -> (i32, i32) {
    %c0_i32 = arith.constant 0 : i32
    %c0_i32_0 = arith.constant 0 : i32
    return %arg0, %c0_i32 : i32, i32
  }
  func.func @transform_2(%arg0: i32) -> (i32, i32, i32) {
    %c0_i32 = arith.constant 0 : i32
    %c0_i32_0 = arith.constant 0 : i32
    %c0_i32_1 = arith.constant 0 : i32
    return %arg0, %c0_i32, %c0_i32_0 : i32, i32, i32
  }
}

</mosaic_0001>

<bundles_post_ra>
// kernel: tpu_custom_call.1
= control target key start
LH: loop header
LB: loop body
LE: loop exit
PB: predicated region body
PF: predicated region fallthrough
CT: control target
= control target key end

     0   :  { %7 = vsyncpa [#allocation3], 0  ;;  %s698_s0 = inlined_call_operand.hbm [shape: f32[16,128], index: 0, kind: input, shape index: {}]   ;;  %s699_s1 = inlined_call_operand.hbm [shape: f32[16,128], index: 1, kind: input, shape index: {}]   ;;  %s700_s2 = inlined_call_operand.hbm [shape: f32[1,8,128], index: 2, kind: output, shape index: {}]  }
   0x1   :  { %8 = vsyncpa [#allocation6], 0 }
   0x2   :  { %9 = vsyncpa [#allocation4], 0  ;;  %s423_s9 = smov [#allocation2]   ;;  %s351_s13 = scalar_lea.hbm %s698_s0, 256 }
   0x3   :  { %s15_s10 = sshll.u32 %s423_s9, 4  ;;  %p352_p0 = scmp.ne.s32.totalorder %s698_s0, %s351_s13  ;;  %s16_s10 = int_to_ptr.vmem [resolvable:$true] %s15_s10 }
   0x4   :  { %p355_p1 = scmp.lt.u32.totalorder %s351_s13, %s698_s0 }
   0x6   :  { %p357_p2 = pnand %p355_p1, %p352_p0 }
   0x8   :  { %360 = shalt.err (!%p357_p2)
}
   0x9   :  { %s361_s18 = scalar_lea.vmem %s16_s10, 256  ;;  %p366_p4 = scmp.lt.s32.totalorder %s16_s10, %s16_s10 }
   0xa   :  { %p362_p3 = scmp.ne.s32.totalorder %s16_s10, %s361_s18  ;;  %p367_p5 = scmp.lt.s32.totalorder %s361_s18, %s361_s18 }
   0xc   :  { %p368_p6 = por %p367_p5, %p366_p4 }
   0xe   :  { %p369_p7 = pnand %p368_p6, %p362_p3 }
  0x10   :  { %372 = shalt.err (!%p369_p7)
}
  0x11   :  { %s424_s19 = smov 128   ;;  %s425_s20 = smov 8  }
  0x12   :  { %21 = dma.hbm_to_vmem [thread:$0]  %s698_s0, 256, %s16_s10, [#allocation3], %s424_s19, %s424_s19, %s425_s20  }
  0x13   :  { %s426_s23 = smov [#allocation5]   ;;  %s373_s27 = scalar_lea.hbm %s699_s1, 256 }
  0x14   :  { %s27_s24 = sshll.u32 %s426_s23, 4  ;;  %p374_p8 = scmp.ne.s32.totalorder %s699_s1, %s373_s27  ;;  %s28_s24 = int_to_ptr.vmem [resolvable:$true] %s27_s24 }
  0x15   :  { %p377_p9 = scmp.lt.u32.totalorder %s373_s27, %s699_s1 }
  0x17   :  { %p379_p10 = pnand %p377_p9, %p374_p8 }
  0x19   :  { %382 = shalt.err (!%p379_p10)
}
  0x1a   :  { %s383_s4 = scalar_lea.vmem %s28_s24, 256  ;;  %p388_p12 = scmp.lt.s32.totalorder %s28_s24, %s28_s24 }
  0x1b   :  { %p384_p11 = scmp.ne.s32.totalorder %s28_s24, %s383_s4  ;;  %p389_p13 = scmp.lt.s32.totalorder %s383_s4, %s383_s4 }
  0x1d   :  { %p390_p0 = por %p389_p13, %p388_p12 }
  0x1f   :  { %p391_p1 = pnand %p390_p0, %p384_p11 }
  0x21   :  { %394 = shalt.err (!%p391_p1)
}
  0x22   :  { %33 = dma.hbm_to_vmem [thread:$0]  %s699_s1, 256, %s28_s24, [#allocation6], %s424_s19, %s424_s19, %s425_s20  }
  0x23   :  { %417 = dma.done.wait [#allocation3], 256  }
  0x24   :  { %418 = vsyncadd [#allocation3], 4294967040 }
  0x25   :  { %419 = dma.done.wait [#allocation6], 256  }
  0x26   :  { %420 = vsyncadd [#allocation6], 4294967040  ;;  %v57_v0 = vlaneseq  ;;  %s427_s6 = smov 1   ;;  %v480_v2 = vld [vmem:[#allocation2 + $0x8] sm:$0xff]  ;;  %v482_v3 = vld [vmem:[#allocation2] sm:$0xff]  ;;  %s428_s1 = smov 127  }
  0x27   :  { %77 = vrot.lane.b32.xlu1 %v480_v2, %s427_s6  ;;  %v492_v4 = vld [vmem:[#allocation5] sm:$0xff]  ;;  %v494_v5 = vld [vmem:[#allocation5 + $0x8] sm:$0xff]  ;;  %s429_s7 = smov 2   ;;  %s430_s8 = smov 126  }
  0x28   :  { %v476_v1 = vand.u32 127, %v57_v0  ;;  %s431_s9 = smov 4   ;;  %s432_s10 = smov 124  }
  0x29   :  { %s433_s11 = smov 120   ;;  %s434_s12 = smov [#allocation7]  }
  0x2a   :  { %59 = vrot.lane.b32.xlu0 %v476_v1, %s427_s6  ;;  %v61_v7 = vxor.u32 1, %v476_v1  ;;  %v65_v26 = vxor.u32 2, %v476_v1  ;;  %v69_v45 = vxor.u32 4, %v476_v1  ;;  %v73_v0 = vxor.u32 8, %v476_v1  ;;  %s309_s13 = sshll.u32 %s434_s12, 4  ;;  %s310_s13 = int_to_ptr.vmem [resolvable:$true] %s309_s13 }
  0x2b   :  { %79 = vrot.lane.b32.xlu1 %v482_v3, %s428_s1  ;;  %s395_s14 = scalar_lea.vmem %s310_s13, 128  ;;  %p400_p3 = scmp.lt.s32.totalorder %s310_s13, %s310_s13 }
  0x2c   :  { %p396_p2 = scmp.ne.s32.totalorder %s310_s13, %s395_s14  ;;  %p401_p4 = scmp.lt.s32.totalorder %s395_s14, %s395_s14 }
  0x2e   :  { %75 = vrot.lane.b32.xlu0 %v482_v3, %s427_s6  ;;  %p402_p5 = por %p401_p4, %p400_p3 }
  0x2f   :  { %183 = vrot.lane.b32.xlu1 %v492_v4, %s427_s6 }
  0x30   :  { %p403_p6 = pnand %p402_p5, %p396_p2 }
  0x32   :  { %81 = vrot.lane.b32.xlu0 %v480_v2, %s428_s1 }
  0x33   :  { %187 = vrot.lane.b32.xlu1 %v492_v4, %s428_s1 }
  0x36   :  { %185 = vrot.lane.b32.xlu0 %v494_v5, %s427_s6 }
  0x37   :  { %63 = vrot.lane.b32.xlu1 %v476_v1, %s429_s7 }
  0x3a   :  { %189 = vrot.lane.b32.xlu0 %v494_v5, %s428_s1 }
  0x99   :  { %v78_v8 = vpop.permute.xlu1 %77 }
  0x9c   :  { %v60_v6 = vpop.permute.xlu0 %59 }
  0x9d   :  { %vm507_vm0 = vcmp.eq.s32.totalorder %v60_v6, %v61_v7  ;;  %v80_v11 = vpop.permute.xlu1 %79 }
  0xa0   :  { %v76_v9 = vpop.permute.xlu0 %75 }
  0xa1   :  { %v83_v13 = vsel %vm507_vm0, %v76_v9, %v80_v11  ;;  %v184_v17 = vpop.permute.xlu1 %183 }
  0xa2   :  { %v85_v15 = vmax.f32 %v482_v3, %v83_v13 }
  0xa4   :  { %v82_v12 = vpop.permute.xlu0 %81  ;;  %87 = vrot.lane.b32.xlu0 %v85_v15, %s429_s7 }
  0xa5   :  { %v84_v14 = vsel %vm507_vm0, %v78_v8, %v82_v12  ;;  %v188_v19 = vpop.permute.xlu1 %187 }
  0xa6   :  { %v86_v16 = vmax.f32 %v480_v2, %v84_v14  ;;  %v191_v21 = vsel %vm507_vm0, %v184_v17, %v188_v19 }
  0xa7   :  { %v193_v23 = vmax.f32 %v492_v4, %v191_v21 }
  0xa8   :  { %89 = vrot.lane.b32.xlu1 %v86_v16, %s429_s7  ;;  %v186_v18 = vpop.permute.xlu0 %185  ;;  %91 = vrot.lane.b32.xlu0 %v85_v15, %s430_s8 }
  0xa9   :  { %v64_v25 = vpop.permute.xlu1 %63 }
  0xaa   :  { %vm534_vm1 = vcmp.eq.s32.totalorder %v64_v25, %v65_v26 }
  0xac   :  { %93 = vrot.lane.b32.xlu1 %v86_v16, %s430_s8  ;;  %v190_v20 = vpop.permute.xlu0 %189  ;;  %195 = vrot.lane.b32.xlu0 %v193_v23, %s429_s7 }
  0xad   :  { %v192_v22 = vsel %vm507_vm0, %v186_v18, %v190_v20 }
  0xae   :  { %v194_v24 = vmax.f32 %v494_v5, %v192_v22 }
  0xb0   :  { %197 = vrot.lane.b32.xlu1 %v194_v24, %s429_s7  ;;  %199 = vrot.lane.b32.xlu0 %v193_v23, %s430_s8 }
  0xb4   :  { %201 = vrot.lane.b32.xlu1 %v194_v24, %s430_s8  ;;  %67 = vrot.lane.b32.xlu0 %v476_v1, %s431_s9 }
 0x116   :  { %v88_v28 = vpop.permute.xlu0 %87 }
 0x11a   :  { %v90_v27 = vpop.permute.xlu1 %89  ;;  %v92_v31 = vpop.permute.xlu0 %91 }
 0x11b   :  { %v95_v33 = vsel %vm534_vm1, %v88_v28, %v92_v31 }
 0x11c   :  { %v97_v35 = vmax.f32 %v85_v15, %v95_v33 }
 0x11e   :  { %v94_v30 = vpop.permute.xlu1 %93  ;;  %99 = vrot.lane.b32.xlu1 %v97_v35, %s431_s9  ;;  %v196_v37 = vpop.permute.xlu0 %195 }
 0x11f   :  { %v96_v32 = vsel %vm534_vm1, %v90_v27, %v94_v30 }
 0x120   :  { %v98_v34 = vmax.f32 %v86_v16, %v96_v32 }
 0x122   :  { %101 = vrot.lane.b32.xlu0 %v98_v34, %s431_s9  ;;  %v198_v36 = vpop.permute.xlu1 %197  ;;  %103 = vrot.lane.b32.xlu1 %v97_v35, %s432_s10  ;;  %v200_v39 = vpop.permute.xlu0 %199 }
 0x123   :  { %v203_v41 = vsel %vm534_vm1, %v196_v37, %v200_v39 }
 0x124   :  { %v205_v43 = vmax.f32 %v193_v23, %v203_v41 }
 0x126   :  { %105 = vrot.lane.b32.xlu0 %v98_v34, %s432_s10  ;;  %v202_v38 = vpop.permute.xlu1 %201  ;;  %207 = vrot.lane.b32.xlu1 %v205_v43, %s431_s9  ;;  %v68_v44 = vpop.permute.xlu0 %67 }
 0x127   :  { %v204_v40 = vsel %vm534_vm1, %v198_v36, %v202_v38  ;;  %vm557_vm2 = vcmp.eq.s32.totalorder %v68_v44, %v69_v45 }
 0x128   :  { %v206_v42 = vmax.f32 %v194_v24, %v204_v40 }
 0x12a   :  { %209 = vrot.lane.b32.xlu0 %v206_v42, %s431_s9  ;;  %211 = vrot.lane.b32.xlu1 %v205_v43, %s432_s10 }
 0x12e   :  { %213 = vrot.lane.b32.xlu0 %v206_v42, %s432_s10  ;;  %71 = vrot.lane.b32.xlu1 %v476_v1, %s425_s20 }
 0x190   :  { %v100_v46 = vpop.permute.xlu1 %99 }
 0x194   :  { %v102_v47 = vpop.permute.xlu0 %101  ;;  %v104_v49 = vpop.permute.xlu1 %103 }
 0x195   :  { %v107_v51 = vsel %vm557_vm2, %v100_v46, %v104_v49 }
 0x196   :  { %v109_v53 = vmax.f32 %v97_v35, %v107_v51 }
 0x198   :  { %v106_v50 = vpop.permute.xlu0 %105  ;;  %v208_v55 = vpop.permute.xlu1 %207  ;;  %111 = vrot.lane.b32.xlu0 %v109_v53, %s425_s20 }
 0x199   :  { %v108_v52 = vsel %vm557_vm2, %v102_v47, %v106_v50 }
 0x19a   :  { %v110_v54 = vmax.f32 %v98_v34, %v108_v52 }
 0x19c   :  { %113 = vrot.lane.b32.xlu1 %v110_v54, %s425_s20  ;;  %v210_v56 = vpop.permute.xlu0 %209  ;;  %v212_v57 = vpop.permute.xlu1 %211  ;;  %115 = vrot.lane.b32.xlu0 %v109_v53, %s433_s11 }
 0x19d   :  { %v215_v59 = vsel %vm557_vm2, %v208_v55, %v212_v57 }
 0x19e   :  { %v217_v61 = vmax.f32 %v205_v43, %v215_v59 }
 0x1a0   :  { %117 = vrot.lane.b32.xlu1 %v110_v54, %s433_s11  ;;  %v214_v58 = vpop.permute.xlu0 %213  ;;  %219 = vrot.lane.b32.xlu0 %v217_v61, %s425_s20  ;;  %v72_v63 = vpop.permute.xlu1 %71 }
 0x1a1   :  { %v216_v60 = vsel %vm557_vm2, %v210_v56, %v214_v58  ;;  %vm578_vm3 = vcmp.eq.s32.totalorder %v72_v63, %v73_v0 }
 0x1a2   :  { %v218_v62 = vmax.f32 %v206_v42, %v216_v60 }
 0x1a4   :  { %221 = vrot.lane.b32.xlu1 %v218_v62, %s425_s20  ;;  %223 = vrot.lane.b32.xlu0 %v217_v61, %s433_s11 }
 0x1a8   :  { %225 = vrot.lane.b32.xlu1 %v218_v62, %s433_s11 }
 0x20a   :  { %v112_v7 = vpop.permute.xlu0 %111 }
 0x20e   :  { %v114_v6 = vpop.permute.xlu1 %113  ;;  %v116_v11 = vpop.permute.xlu0 %115 }
 0x20f   :  { %v119_v13 = vsel %vm578_vm3, %v112_v7, %v116_v11 }
 0x210   :  { %v121_v15 = vmax.f32 %v109_v53, %v119_v13 }
 0x212   :  { %v118_v9 = vpop.permute.xlu1 %117  ;;  %v590_v1 = vsub.f32 %v482_v3, %v121_v15  ;;  %v220_v18 = vpop.permute.xlu0 %219 }
 0x213   :  { %v120_v12 = vsel %vm578_vm3, %v114_v6, %v118_v9 }
 0x214   :  { %v122_v14 = vmax.f32 %v110_v54, %v120_v12  ;;  %v125_v20 = vmul.f32 1.442695, %v590_v1 }
 0x216   :  { %v587_v16 = vsub.f32 %v480_v2, %v122_v14  ;;  %v222_v17 = vpop.permute.xlu1 %221  ;;  %v224_v22 = vpop.permute.xlu0 %223 }
 0x217   :  { %v227_v2 = vsel %vm578_vm3, %v220_v18, %v224_v22 }
 0x218   :  { %v127_v19 = vmul.f32 1.442695, %v587_v16  ;;  %v229_v25 = vmax.f32 %v217_v61, %v227_v2 }
 0x21a   :  { %331 = vpow2.f32 %v127_v19  ;;  %v226_v21 = vpop.permute.xlu1 %225  ;;  %v602_v26 = vsub.f32 %v492_v4, %v229_v25 }
 0x21b   :  { %333 = vpow2.f32 %v125_v20  ;;  %v228_v23 = vsel %vm578_vm3, %v222_v17, %v226_v21 }
 0x21c   :  { %v230_v24 = vmax.f32 %v218_v62, %v228_v23  ;;  %v233_v28 = vmul.f32 1.442695, %v602_v26 }
 0x21e   :  { %v599_v3 = vsub.f32 %v494_v5, %v230_v24 }
 0x220   :  { %v235_v27 = vmul.f32 1.442695, %v599_v3 }
 0x222   :  { %335 = vpow2.f32 %v235_v27 }
 0x223   :  { %337 = vpow2.f32 %v233_v28 }
 0x224   :  { %v332_v30 = vpop.eup %331 }
 0x225   :  { %v334_v31 = vpop.eup %333  ;;  %131 = vrot.lane.b32.xlu1 %v332_v30, %s427_s6 }
 0x226   :  { %129 = vrot.lane.b32.xlu0 %v334_v31, %s427_s6 }
 0x229   :  { %135 = vrot.lane.b32.xlu1 %v332_v30, %s428_s1 }
 0x22a   :  { %133 = vrot.lane.b32.xlu0 %v334_v31, %s428_s1 }
 0x22c   :  { %v610_v5 = vpop.eup %335 }
 0x22d   :  { %v612_v4 = vpop.eup %337  ;;  %239 = vrot.lane.b32.xlu1 %v610_v5, %s427_s6 }
 0x22e   :  { %237 = vrot.lane.b32.xlu0 %v612_v4, %s427_s6 }
 0x231   :  { %243 = vrot.lane.b32.xlu1 %v610_v5, %s428_s1 }
 0x232   :  { %241 = vrot.lane.b32.xlu0 %v612_v4, %s428_s1 }
 0x297   :  { %v132_v32 = vpop.permute.xlu1 %131 }
 0x298   :  { %v130_v33 = vpop.permute.xlu0 %129 }
 0x29b   :  { %v136_v34 = vpop.permute.xlu1 %135 }
 0x29c   :  { %v138_v35 = vsel %vm507_vm0, %v132_v32, %v136_v34  ;;  %v134_v36 = vpop.permute.xlu0 %133 }
 0x29d   :  { %v140_v37 = vadd.f32 %v332_v30, %v138_v35  ;;  %v137_v38 = vsel %vm507_vm0, %v130_v33, %v134_v36 }
 0x29e   :  { %v139_v39 = vadd.f32 %v334_v31, %v137_v38 }
 0x29f   :  { %143 = vrot.lane.b32.xlu1 %v140_v37, %s429_s7  ;;  %v240_v40 = vpop.permute.xlu1 %239 }
 0x2a0   :  { %141 = vrot.lane.b32.xlu0 %v139_v39, %s429_s7  ;;  %v238_v41 = vpop.permute.xlu0 %237 }
 0x2a3   :  { %147 = vrot.lane.b32.xlu1 %v140_v37, %s430_s8  ;;  %v244_v42 = vpop.permute.xlu1 %243 }
 0x2a4   :  { %v246_v43 = vsel %vm507_vm0, %v240_v40, %v244_v42  ;;  %145 = vrot.lane.b32.xlu0 %v139_v39, %s430_s8  ;;  %v242_v44 = vpop.permute.xlu0 %241 }
 0x2a5   :  { %v248_v45 = vadd.f32 %v610_v5, %v246_v43  ;;  %v245_v46 = vsel %vm507_vm0, %v238_v41, %v242_v44 }
 0x2a6   :  { %v247_v47 = vadd.f32 %v612_v4, %v245_v46 }
 0x2a7   :  { %251 = vrot.lane.b32.xlu1 %v248_v45, %s429_s7 }
 0x2a8   :  { %249 = vrot.lane.b32.xlu0 %v247_v47, %s429_s7 }
 0x2ab   :  { %255 = vrot.lane.b32.xlu1 %v248_v45, %s430_s8 }
 0x2ac   :  { %253 = vrot.lane.b32.xlu0 %v247_v47, %s430_s8 }
 0x311   :  { %v144_v49 = vpop.permute.xlu1 %143 }
 0x312   :  { %v142_v50 = vpop.permute.xlu0 %141 }
 0x315   :  { %v148_v51 = vpop.permute.xlu1 %147 }
 0x316   :  { %v150_v52 = vsel %vm534_vm1, %v144_v49, %v148_v51  ;;  %v146_v53 = vpop.permute.xlu0 %145 }
 0x317   :  { %v152_v54 = vadd.f32 %v150_v52, %v140_v37  ;;  %v149_v10 = vsel %vm534_vm1, %v142_v50, %v146_v53 }
 0x318   :  { %v151_v55 = vadd.f32 %v149_v10, %v139_v39 }
 0x319   :  { %155 = vrot.lane.b32.xlu1 %v152_v54, %s431_s9  ;;  %v252_v56 = vpop.permute.xlu1 %251 }
 0x31a   :  { %153 = vrot.lane.b32.xlu0 %v151_v55, %s431_s9  ;;  %v250_v57 = vpop.permute.xlu0 %249 }
 0x31d   :  { %159 = vrot.lane.b32.xlu1 %v152_v54, %s432_s10  ;;  %v256_v58 = vpop.permute.xlu1 %255 }
 0x31e   :  { %v258_v59 = vsel %vm534_vm1, %v252_v56, %v256_v58  ;;  %157 = vrot.lane.b32.xlu0 %v151_v55, %s432_s10  ;;  %v254_v60 = vpop.permute.xlu0 %253 }
 0x31f   :  { %v260_v61 = vadd.f32 %v258_v59, %v248_v45  ;;  %v257_v62 = vsel %vm534_vm1, %v250_v57, %v254_v60 }
 0x320   :  { %v259_v63 = vadd.f32 %v257_v62, %v247_v47 }
 0x321   :  { %263 = vrot.lane.b32.xlu1 %v260_v61, %s431_s9 }
 0x322   :  { %261 = vrot.lane.b32.xlu0 %v259_v63, %s431_s9 }
 0x325   :  { %267 = vrot.lane.b32.xlu1 %v260_v61, %s432_s10 }
 0x326   :  { %265 = vrot.lane.b32.xlu0 %v259_v63, %s432_s10 }
 0x38b   :  { %v156_v0 = vpop.permute.xlu1 %155 }
 0x38c   :  { %v154_v6 = vpop.permute.xlu0 %153 }
 0x38f   :  { %v160_v7 = vpop.permute.xlu1 %159 }
 0x390   :  { %v162_v9 = vsel %vm557_vm2, %v156_v0, %v160_v7  ;;  %v158_v11 = vpop.permute.xlu0 %157 }
 0x391   :  { %v164_v12 = vadd.f32 %v162_v9, %v152_v54  ;;  %v161_v29 = vsel %vm557_vm2, %v154_v6, %v158_v11 }
 0x392   :  { %v163_v13 = vadd.f32 %v161_v29, %v151_v55 }
 0x393   :  { %167 = vrot.lane.b32.xlu1 %v164_v12, %s425_s20  ;;  %v264_v14 = vpop.permute.xlu1 %263 }
 0x394   :  { %165 = vrot.lane.b32.xlu0 %v163_v13, %s425_s20  ;;  %v262_v15 = vpop.permute.xlu0 %261 }
 0x397   :  { %171 = vrot.lane.b32.xlu1 %v164_v12, %s433_s11  ;;  %v268_v17 = vpop.permute.xlu1 %267 }
 0x398   :  { %v270_v18 = vsel %vm557_vm2, %v264_v14, %v268_v17  ;;  %169 = vrot.lane.b32.xlu0 %v163_v13, %s433_s11  ;;  %v266_v19 = vpop.permute.xlu0 %265 }
 0x399   :  { %v272_v20 = vadd.f32 %v270_v18, %v260_v61  ;;  %v269_v21 = vsel %vm557_vm2, %v262_v15, %v266_v19 }
 0x39a   :  { %v271_v22 = vadd.f32 %v269_v21, %v259_v63 }
 0x39b   :  { %275 = vrot.lane.b32.xlu1 %v272_v20, %s425_s20 }
 0x39c   :  { %273 = vrot.lane.b32.xlu0 %v271_v22, %s425_s20 }
 0x39f   :  { %279 = vrot.lane.b32.xlu1 %v272_v20, %s433_s11 }
 0x3a0   :  { %277 = vrot.lane.b32.xlu0 %v271_v22, %s433_s11 }
 0x405   :  { %v168_v23 = vpop.permute.xlu1 %167 }
 0x406   :  { %v166_v2 = vpop.permute.xlu0 %165 }
 0x409   :  { %v172_v24 = vpop.permute.xlu1 %171 }
 0x40a   :  { %v174_v25 = vsel %vm578_vm3, %v168_v23, %v172_v24  ;;  %v170_v27 = vpop.permute.xlu0 %169 }
 0x40b   :  { %v173_v48 = vsel %vm578_vm3, %v166_v2, %v170_v27  ;;  %v176_v28 = vadd.f32 %v174_v25, %v164_v12 }
 0x40c   :  { %v175_v32 = vadd.f32 %v173_v48, %v163_v13 }
 0x40d   :  { %v276_v30 = vpop.permute.xlu1 %275  ;;  %339 = vlog2.f32 %v176_v28 }
 0x40e   :  { %v274_v31 = vpop.permute.xlu0 %273  ;;  %341 = vlog2.f32 %v175_v32 }
 0x411   :  { %v280_v33 = vpop.permute.xlu1 %279 }
 0x412   :  { %v282_v34 = vsel %vm578_vm3, %v276_v30, %v280_v33  ;;  %v278_v35 = vpop.permute.xlu0 %277 }
 0x413   :  { %v284_v36 = vadd.f32 %v282_v34, %v272_v20  ;;  %v281_v37 = vsel %vm578_vm3, %v274_v31, %v278_v35 }
 0x414   :  { %v283_v38 = vadd.f32 %v281_v37, %v271_v22 }
 0x415   :  { %343 = vlog2.f32 %v284_v36 }
 0x416   :  { %345 = vrcp.f32 %v284_v36 }
 0x417   :  { %347 = vlog2.f32 %v283_v38  ;;  %v340_v39 = vpop.eup %339 }
 0x418   :  { %349 = vrcp.f32 %v283_v38  ;;  %v342_v40 = vpop.eup %341  ;;  %v180_v41 = vmul.f32 0.6931472, %v340_v39 }
 0x419   :  { %v178_v44 = vmul.f32 0.6931472, %v342_v40 }
 0x41a   :  { %v182_v47 = vsub.f32 %v587_v16, %v180_v41 }
 0x41b   :  { %v181_v51 = vsub.f32 %v590_v1, %v178_v44 }
 0x41f   :  { %v344_v42 = vpop.eup %343 }
 0x420   :  { %v346_v43 = vpop.eup %345  ;;  %v288_v45 = vmul.f32 0.6931472, %v344_v42 }
 0x421   :  { %v348_v46 = vpop.eup %347  ;;  %v294_v53 = vmul.f32 %v346_v43, %v610_v5 }
 0x422   :  { %v290_v49 = vsub.f32 %v599_v3, %v288_v45  ;;  %v286_v50 = vmul.f32 0.6931472, %v348_v46  ;;  %v350_v8 = vpop.eup %349 }
 0x423   :  { %v293_v10 = vmul.f32 %v350_v8, %v612_v4 }
 0x424   :  { %v289_v52 = vsub.f32 %v602_v26, %v286_v50  ;;  %v296_v54 = vsub.f32 %v290_v49, %v182_v47 }
 0x426   :  { %v295_v55 = vsub.f32 %v289_v52, %v181_v51  ;;  %v298_v56 = vmul.f32 %v296_v54, %v294_v53 }
 0x428   :  { %v297_v57 = vmul.f32 %v295_v55, %v293_v10 }
 0x42a   :  { %v301_v58 = vadd.f32 %v298_v56, %v297_v57 }
 0x42c   :  { %302 = vst [vmem:[#allocation7] sm:$0xff] %v301_v58 }
 0x42d   :  { %406 = shalt.err (!%p403_p6)
}
 0x42e   :  { %s407_s17 = scalar_lea.hbm %s700_s2, 128 }
 0x42f   :  { %p408_p7 = scmp.ne.s32.totalorder %s700_s2, %s407_s17  ;;  %p411_p8 = scmp.lt.u32.totalorder %s407_s17, %s700_s2 }
 0x431   :  { %p413_p9 = pnand %p411_p8, %p408_p7 }
 0x433   :  { %416 = shalt.err (!%p413_p9)
}
 0x434   :  { %312 = dma.vmem_to_hbm [thread:$0]  %s310_s13, 128, %s700_s2, [#allocation4]  }
 0x435   :  { %421 = dma.done.wait [#allocation4], 128  }
 0x436   :  { %422 = vsyncadd [#allocation4], 4294967168 }
 0x437   :  { %316 = vsyncpa [#allocation3], 1 }
 0x438   :  { %317 = vsyncpa [#allocation6], 1 }
 0x439   :  { %318 = vsyncpa [#allocation4], 1 }

</bundles_post_ra>
